<compile_context>
chip_gen: v5e
topology: v5e:2x2
jax: 0.10.0
libtpu: 0.0.40
codegen_flags: <defaults>
</compile_context>

<pallas_src>
import jax
import jax.numpy as jnp
from jax.experimental import pallas as pl
from jax.experimental.pallas import tpu as pltpu


def _round_up(v: int, m: int) -> int:
    return ((v + m - 1) // m) * m


def _vmem_limit_bytes() -> int:
    """Per-generation scoped-VMEM budget (conservative on v7x's 64 MiB VMEM)."""
    cap = 128 * 2 ** 20
    try:
        cap = int(pltpu.get_tpu_info().vmem_capacity_bytes)
    except Exception:
        pass
    return int(min(cap * 4 // 5, 100 * 2 ** 20))


def _bspec(shape, index_map, buffer_count=None):
    """BlockSpec, optionally requesting an explicit pipeline buffer count."""
    if buffer_count is not None:
        try:
            return pl.BlockSpec(shape, index_map,
                                pipeline_mode=pl.Buffered(buffer_count))
        except (TypeError, ValueError):
            pass  # older jax without pipeline_mode: fall back to default
    return pl.BlockSpec(shape, index_map)


def _choose_block_b(B, Sp, Ep, C, Kp, in_itemsize, out_itemsize, vmem_limit):
    """Batch rows per grid step, sized from the VMEM budget."""
    B8 = _round_up(B, 8)
    # VMEM that does not scale with TB (single-buffered weights / codes / bias).
    fixed = (Ep * C + C * Kp) * in_itemsize + C * 4
    # Per-batch-row VMEM: double-buffered x / out / mask blocks plus f32
    # intermediates (proj, scores, transposed scores, attn, matmul accumulator)
    # and slack for the in-kernel reshape.
    per_row = (2 * Sp * Ep * in_itemsize
               + 2 * Kp * Ep * out_itemsize
               + 2 * Sp * 4
               + Sp * (C + Kp) * 4
               + 2 * Kp * Sp * 4
               + Kp * Ep * 4
               + Sp * Ep * in_itemsize)
    budget = max(vmem_limit - fixed, 4 * 2 ** 20)
    tb_budget = max(8, ((int(0.55 * budget) // per_row) // 8) * 8)
    # Keep grid >= 2 when the batch allows it so both of v7x's TensorCores get
    # a share of the (embarrassingly batch-parallel) work.
    tb_grid = max(8, ((B8 // 2) // 8) * 8) if B8 >= 16 else B8
    tb_max = max(8, min(tb_budget, tb_grid, 512))
    # Largest TB <= tb_max whose batch padding waste is zero or <= 12.5%.
    best = 8
    for tb in range(8, tb_max + 1, 8):
        waste = _round_up(B8, tb) - B8
        if waste == 0 or waste * 8 <= B8:
            best = tb
    return best


def _poly_attention_kernel(x_ref, w_ref, b_ref, codes_ref, mfill_ref, o_ref):
    # x_ref:     (TB, Sp, Ep)  activations (zero padded; possibly bf16)
    # w_ref:     (Ep, C)       projection weight (pre-transposed vs. PyTorch)
    # b_ref:     (1, C)        projection bias (f32)
    # codes_ref: (C, Kp)       context codes (zero padded along K)
    # mfill_ref: (TB, Sp)      fill values: 0 keep / -1e9 masked / -1e30 pad
    # o_ref:     (TB, Kp, Ep)  poly representations
    TB, Sp, Ep = x_ref.shape
    Kp = codes_ref.shape[1]

    x = x_ref[...]
    xf = x.reshape(TB * Sp, Ep)                                  # free (Sp%8==0)

    # Projection + score matmuls fused across the whole batch block: MXU M
    # dimension is TB*Sp rows; accumulation in f32.
    proj = jnp.tanh(
        jnp.dot(xf, w_ref[...], preferred_element_type=jnp.float32)
        + b_ref[...])                                            # (TB*Sp, C)
    scores = jnp.dot(proj.astype(codes_ref.dtype), codes_ref[...],
                     preferred_element_type=jnp.float32)         # (TB*Sp, Kp)

    # (TB, Kp, Sp) score layout; masked softmax over Sp using *fill* semantics
    # so a fully masked row degrades to a uniform average over real positions.
    s = jnp.swapaxes(scores.reshape(TB, Sp, Kp), 1, 2)           # (TB, Kp, Sp)
    fill = mfill_ref[...][:, None, :]                            # (TB, 1, Sp)
    s = jnp.where(fill == 0.0, s, fill)
    s = s - jnp.max(s, axis=-1, keepdims=True)
    e = jnp.exp(s)
    attn = e * pl.reciprocal(jnp.sum(e, axis=-1, keepdims=True), approx=True)

    # Batched (Kp, Sp) @ (Sp, Ep) over the block; one dense lane-aligned store.
    out = jnp.einsum("bks,bse->bke", attn.astype(x.dtype), x,
                     preferred_element_type=jnp.float32)         # (TB, Kp, Ep)
    o_ref[...] = out.astype(o_ref.dtype)


def poly_attention(x, w_proj, b_proj, context_codes, attn_mask=None, *,
                   block_b=None, use_bf16_mxu=True):
    """PolyAttention forward.

    x:             (B, S, E)
    w_proj:        (E, C)  == nn.Linear(E, C).weight.T
    b_proj:        (C,)
    context_codes: (C, K)
    attn_mask:     optional (B, S); >0 = keep, 0 = masked.
    use_bf16_mxu:  feed MXU operands in bf16 (f32 accumulation).  Slightly
                   lower precision on the final weighted average; use False
                   for exact-dtype matmuls.
    Returns (B, K, E) in x.dtype.
    """
    B, S, E = x.shape
    C, K = context_codes.shape
    assert w_proj.shape == (E, C) and b_proj.shape == (C,)
    out_dtype = x.dtype

    Sp = _round_up(S, 8)      # sublane-align the sequence (free reshape)
    Ep = _round_up(E, 128)    # lane-dense activations / outputs
    Kp = _round_up(K, 8)      # full-sublane score / output tiles

    mxu_dtype = jnp.bfloat16 if use_bf16_mxu else x.dtype
    in_itemsize = jnp.dtype(mxu_dtype).itemsize
    out_itemsize = jnp.dtype(out_dtype).itemsize

    vmem_limit = _vmem_limit_bytes()
    if block_b is None:
        TB = _choose_block_b(B, Sp, Ep, C, Kp, in_itemsize, out_itemsize,
                             vmem_limit)
    else:
        TB = max(8, _round_up(min(block_b, _round_up(B, 8)), 8))
    Bp = _round_up(B, TB)
    grid = (Bp // TB,)

    # Activation prep: cast + pad are adjacent elementwise ops (fused into one
    # HBM pass by XLA); skipped entirely when already conformant.
    xk = x if x.dtype == mxu_dtype else x.astype(mxu_dtype)
    if (Bp, Sp, Ep) != (B, S, E):
        xk = jnp.pad(xk, ((0, Bp - B), (0, Sp - S), (0, Ep - E)))

    wk = w_proj if Ep == E else jnp.pad(w_proj, ((0, Ep - E), (0, 0)))
    wk = wk.astype(mxu_dtype)
    ck = context_codes if Kp == K else jnp.pad(context_codes,
                                               ((0, 0), (0, Kp - K)))
    ck = ck.astype(mxu_dtype)
    bias2d = b_proj.reshape(1, C).astype(jnp.float32)

    # Per-position fill values: 0 = keep score, -1e9 = masked real position
    # (masked_softmax's -1e9 fill, incl. the uniform fallback for fully masked
    # rows), -1e30 = padded position (always excluded, exp underflows to 0).
    if attn_mask is None:
        mfill = jnp.zeros((B, S), jnp.float32)
    else:
        mfill = jnp.where(attn_mask > 0, 0.0, -1e9).astype(jnp.float32)
    if (Bp, Sp) != (B, S):
        mfill = jnp.pad(mfill, ((0, Bp - B), (0, Sp - S)),
                        constant_values=-1e30)

    in_specs = [
        pl.BlockSpec((TB, Sp, Ep), lambda b: (b, 0, 0)),          # x (pipelined)
        _bspec((Ep, C), lambda b: (0, 0), buffer_count=1),        # W (invariant)
        _bspec((1, C), lambda b: (0, 0), buffer_count=1),         # bias
        _bspec((C, Kp), lambda b: (0, 0), buffer_count=1),        # context codes
        pl.BlockSpec((TB, Sp), lambda b: (b, 0)),                 # mask fill
    ]
    out_specs = pl.BlockSpec((TB, Kp, Ep), lambda b: (b, 0, 0))

    flops = (2 * Bp * Sp * Ep * C + 2 * Bp * Sp * C * Kp
             + 2 * Bp * Kp * Sp * Ep)
    transcendentals = Bp * Sp * C + Bp * Kp * Sp
    bytes_accessed = (Bp * Sp * Ep * in_itemsize
                      + (Ep * C + C * Kp) * in_itemsize + C * 4
                      + Bp * Sp * 4
                      + Bp * Kp * Ep * out_itemsize)
    cost = pl.CostEstimate(flops=int(flops),
                           transcendentals=int(transcendentals),
                           bytes_accessed=int(bytes_accessed))

    out = pl.pallas_call(
        _poly_attention_kernel,
        out_shape=jax.ShapeDtypeStruct((Bp, Kp, Ep), out_dtype),
        grid_spec=pltpu.PrefetchScalarGridSpec(
            num_scalar_prefetch=0,
            grid=grid,
            in_specs=in_specs,
            out_specs=out_specs),
        compiler_params=pltpu.CompilerParams(
            dimension_semantics=("parallel",),
            vmem_limit_bytes=int(vmem_limit)),
        cost_estimate=cost,
    )(xk, wk, bias2d, ck, mfill)

    return out[:B, :K, :E]


def poly_attention_ref(x, w_proj, b_proj, context_codes, attn_mask=None):
    """Pure-JAX reference mirroring the PyTorch forward."""
    proj = jnp.tanh(jnp.einsum("bse,ec->bsc", x, w_proj) + b_proj)
    scores = jnp.einsum("bsc,ck->bsk", proj, context_codes)
    scores = jnp.swapaxes(scores, 1, 2)                           # (B, K, S)
    if attn_mask is not None:
        scores = jnp.where(attn_mask[:, None, :] > 0, scores, -1e9)
    attn_w = jax.nn.softmax(scores, axis=2)
    return jnp.einsum("bks,bse->bke", attn_w, x)


if __name__ == "__main__":
    # Small, module-consistent shapes: batch=2, seq=8, embed_dim=32,
    # context_code_dim=16, n_context_codes=4.
    B, S, E, C, K = 2, 8, 32, 16, 4

    key = jax.random.PRNGKey(0)
    k_x, k_w, k_b, k_c, k_x2 = jax.random.split(key, 5)

    x = jax.random.normal(k_x, (B, S, E), dtype=jnp.float32)

    # nn.Linear(E, C): weight (C, E), bias (C); stored transposed as (E, C).
    w_proj = (jax.random.uniform(k_w, (E, C), jnp.float32, -1.0, 1.0)
              * (1.0 / jnp.sqrt(E)))
    b_proj = (jax.random.uniform(k_b, (C,), jnp.float32, -1.0, 1.0)
              * (1.0 / jnp.sqrt(E)))

    # context_codes: xavier_uniform((C, K)) with tanh gain 5/3.
    gain = 5.0 / 3.0
    bound = gain * (6.0 / (C + K)) ** 0.5
    context_codes = jax.random.uniform(k_c, (C, K), jnp.float32, -bound, bound)

    # Attention mask: 1 = valid token, 0 = padded (last two positions, batch 1).
    attn_mask = jnp.ones((B, S), jnp.float32).at[1, -2:].set(0.0)

    ref = poly_attention_ref(x, w_proj, b_proj, context_codes, attn_mask)
    out = jax.block_until_ready(
        poly_attention(x, w_proj, b_proj, context_codes, attn_mask,
                       use_bf16_mxu=False))
    assert out.shape == (B, K, E)
    assert jnp.allclose(out, ref, atol=2e-3, rtol=2e-3), "masked path mismatch"

    # Mask-free path (plain softmax).
    out_nm = jax.block_until_ready(
        poly_attention(x, w_proj, b_proj, context_codes, None,
                       use_bf16_mxu=False))
    ref_nm = poly_attention_ref(x, w_proj, b_proj, context_codes, None)
    assert jnp.allclose(out_nm, ref_nm, atol=2e-3, rtol=2e-3), "no-mask mismatch"

    # Ragged shapes (S=7 -> padded to Sp=8, B=3 -> padded batch block) plus a
    # fully masked row: exercises pad exclusion and the uniform-over-real-S
    # fallback that matches masked_softmax's -1e9 fill.
    B2, S2 = 3, 7
    x2 = jax.random.normal(k_x2, (B2, S2, E), dtype=jnp.float32)
    mask2 = (jnp.ones((B2, S2), jnp.float32)
             .at[1, :3].set(0.0)
             .at[2, :].set(0.0))
    ref2 = poly_attention_ref(x2, w_proj, b_proj, context_codes, mask2)
    out2 = jax.block_until_ready(
        poly_attention(x2, w_proj, b_proj, context_codes, mask2,
                       use_bf16_mxu=False))
    assert out2.shape == (B2, K, E)
    assert jnp.allclose(out2, ref2, atol=2e-3, rtol=2e-3), "ragged path mismatch"

    # bf16 MXU fast path: only dispatchable on a real TPU backend (the
    # interpret/CPU fallback cannot execute BF16xBF16=F32 dots).
    if jax.default_backend() == "tpu":
        out_bf = jax.block_until_ready(
            poly_attention(x, w_proj, b_proj, context_codes, attn_mask,
                           use_bf16_mxu=True))
        rel = jnp.linalg.norm(out_bf - ref) / jnp.linalg.norm(ref)
        assert float(rel) < 0.05, f"bf16 path rel err too large: {rel}"

    print("KERNEL_OK")
</pallas_src>

<mosaic_0001>
module attributes {stable_mosaic.version = 11 : i64} {
  func.func @_poly_attention_kernel(%arg0: i32, %arg1: memref<8x8x128xf32, #tpu.memory_space<vmem>>, %arg2: memref<128x16xf32, #tpu.memory_space<vmem>>, %arg3: memref<1x16xf32, #tpu.memory_space<vmem>>, %arg4: memref<16x8xf32, #tpu.memory_space<vmem>>, %arg5: memref<8x8xf32, #tpu.memory_space<vmem>>, %arg6: memref<8x8x128xf32, #tpu.memory_space<vmem>>) attributes {dimension_semantics = [#tpu.dimension_semantics<parallel>], iteration_bounds = array<i64: 1>, scalar_prefetch = 0 : i64, scratch_operands = 0 : i64, tpu.core_type = #tpu.core_type<tc>, window_params = [{transform_indices = @transform_0, window_bounds = array<i64: 8, 8, 128>}, {pipeline_mode = #tpu.pipeline_mode<synchronous>, transform_indices = @transform_1, window_bounds = array<i64: 128, 16>}, {pipeline_mode = #tpu.pipeline_mode<synchronous>, transform_indices = @transform_2, window_bounds = array<i64: 1, 16>}, {pipeline_mode = #tpu.pipeline_mode<synchronous>, transform_indices = @transform_3, window_bounds = array<i64: 16, 8>}, {transform_indices = @transform_4, window_bounds = array<i64: 8, 8>}, {transform_indices = @transform_5, window_bounds = array<i64: 8, 8, 128>}]} {
    %c0 = arith.constant 0 : index
    %c0_0 = arith.constant 0 : index
    %c0_1 = arith.constant 0 : index
    %0 = vector.load %arg1[%c0, %c0_0, %c0_1] : memref<8x8x128xf32, #tpu.memory_space<vmem>>, vector<8x8x128xf32>
    %1 = vector.shape_cast %0 : vector<8x8x128xf32> to vector<64x128xf32>
    %c0_2 = arith.constant 0 : index
    %c0_3 = arith.constant 0 : index
    %2 = vector.load %arg2[%c0_2, %c0_3] : memref<128x16xf32, #tpu.memory_space<vmem>>, vector<128x16xf32>
    %cst = arith.constant dense<0.000000e+00> : vector<64x16xf32>
    %3 = tpu.matmul %1, %2, %cst {dimension_numbers = #tpu.dot_dimension_numbers<[1], [0], [0], [1], [0, 0, 1, 1], [], []>} : vector<64x128xf32>, vector<128x16xf32>, vector<64x16xf32> -> vector<64x16xf32>
    %c0_4 = arith.constant 0 : index
    %c0_5 = arith.constant 0 : index
    %4 = vector.load %arg3[%c0_4, %c0_5] : memref<1x16xf32, #tpu.memory_space<vmem>>, vector<1x16xf32>
    %5 = vector.broadcast %4 : vector<1x16xf32> to vector<64x16xf32>
    %6 = arith.addf %3, %5 : vector<64x16xf32>
    %7 = math.tanh %6 : vector<64x16xf32>
    %c0_6 = arith.constant 0 : index
    %c0_7 = arith.constant 0 : index
    %8 = vector.load %arg4[%c0_6, %c0_7] : memref<16x8xf32, #tpu.memory_space<vmem>>, vector<16x8xf32>
    %cst_8 = arith.constant dense<0.000000e+00> : vector<64x8xf32>
    %9 = tpu.matmul %7, %8, %cst_8 {dimension_numbers = #tpu.dot_dimension_numbers<[1], [0], [0], [1], [0, 0, 1, 1], [], []>} : vector<64x16xf32>, vector<16x8xf32>, vector<64x8xf32> -> vector<64x8xf32>
    %10 = vector.shape_cast %9 : vector<64x8xf32> to vector<8x8x8xf32>
    %11 = tpu.transpose %10, [0, 2, 1] : vector<8x8x8xf32> -> vector<8x8x8xf32>
    %c0_9 = arith.constant 0 : index
    %c0_10 = arith.constant 0 : index
    %12 = vector.load %arg5[%c0_9, %c0_10] : memref<8x8xf32, #tpu.memory_space<vmem>>, vector<8x8xf32>
    %13 = vector.shape_cast %12 : vector<8x8xf32> to vector<8x1x8xf32>
    %cst_11 = arith.constant 0.000000e+00 : f32
    %14 = vector.broadcast %cst_11 : f32 to vector<8x1x8xf32>
    %15 = arith.cmpf oeq, %13, %14 : vector<8x1x8xf32>
    %16 = vector.shape_cast %15 : vector<8x1x8xi1> to vector<8x1x8xi1>
    %17 = vector.broadcast %16 : vector<8x1x8xi1> to vector<8x8x8xi1>
    %18 = vector.shape_cast %13 : vector<8x1x8xf32> to vector<8x1x8xf32>
    %19 = vector.broadcast %18 : vector<8x1x8xf32> to vector<8x8x8xf32>
    %20 = arith.select %17, %11, %19 : vector<8x8x8xi1>, vector<8x8x8xf32>
    %cst_12 = arith.constant dense<0xFF800000> : vector<8x8xf32>
    %21 = vector.multi_reduction <maximumf>, %20, %cst_12 [2] : vector<8x8x8xf32> to vector<8x8xf32>
    %22 = vector.shape_cast %21 : vector<8x8xf32> to vector<8x8x1xf32>
    %23 = vector.broadcast %22 : vector<8x8x1xf32> to vector<8x8x8xf32>
    %24 = arith.subf %20, %23 : vector<8x8x8xf32>
    %25 = math.exp %24 : vector<8x8x8xf32>
    %cst_13 = arith.constant dense<0.000000e+00> : vector<8x8xf32>
    %26 = vector.multi_reduction <add>, %25, %cst_13 [2] : vector<8x8x8xf32> to vector<8x8xf32>
    %27 = vector.shape_cast %26 : vector<8x8xf32> to vector<8x8x1xf32>
    %28 = tpu.reciprocal %27 {approx = true} : vector<8x8x1xf32> -> vector<8x8x1xf32>
    %29 = vector.broadcast %28 : vector<8x8x1xf32> to vector<8x8x8xf32>
    %30 = arith.mulf %25, %29 : vector<8x8x8xf32>
    "tpu.trace_start"() <{level = 10 : i32, message = "bks,bse->bke"}> : () -> ()
    %cst_14 = arith.constant dense<0.000000e+00> : vector<8x8x128xf32>
    %31 = tpu.matmul %30, %0, %cst_14 {dimension_numbers = #tpu.dot_dimension_numbers<[2], [1], [1], [2], [0, 0, 0, 1, 1, 2], [0], [0]>} : vector<8x8x8xf32>, vector<8x8x128xf32>, vector<8x8x128xf32> -> vector<8x8x128xf32>
    "tpu.trace_stop"() : () -> ()
    %c0_15 = arith.constant 0 : index
    %c0_16 = arith.constant 0 : index
    %c0_17 = arith.constant 0 : index
    %32 = vector.load %arg6[%c0_15, %c0_16, %c0_17] : memref<8x8x128xf32, #tpu.memory_space<vmem>>, vector<8x8x128xf32>
    tpu.vector_store %arg6[%c0_15, %c0_16, %c0_17], %31 {strides = array<i32>} : memref<8x8x128xf32, #tpu.memory_space<vmem>>, vector<8x8x128xf32>,
    return
  }
  func.func @transform_0(%arg0: i32) -> (i32, i32, i32) {
    %c0_i32 = arith.constant 0 : i32
    %c0_i32_0 = arith.constant 0 : i32
    %c0_i32_1 = arith.constant 0 : i32
    return %arg0, %c0_i32, %c0_i32_0 : i32, i32, i32
  }
  func.func @transform_1(%arg0: i32) -> (i32, i32) {
    %c0_i32 = arith.constant 0 : i32
    %c0_i32_0 = arith.constant 0 : i32
    %c0_i32_1 = arith.constant 0 : i32
    return %c0_i32, %c0_i32_0 : i32, i32
  }
  func.func @transform_2(%arg0: i32) -> (i32, i32) {
    %c0_i32 = arith.constant 0 : i32
    %c0_i32_0 = arith.constant 0 : i32
    %c0_i32_1 = arith.constant 0 : i32
    return %c0_i32, %c0_i32_0 : i32, i32
  }
  func.func @transform_3(%arg0: i32) -> (i32, i32) {
    %c0_i32 = arith.constant 0 : i32
    %c0_i32_0 = arith.constant 0 : i32
    %c0_i32_1 = arith.constant 0 : i32
    return %c0_i32, %c0_i32_0 : i32, i32
  }
  func.func @transform_4(%arg0: i32) -> (i32, i32) {
    %c0_i32 = arith.constant 0 : i32
    %c0_i32_0 = arith.constant 0 : i32
    return %arg0, %c0_i32 : i32, i32
  }
  func.func @transform_5(%arg0: i32) -> (i32, i32, i32) {
    %c0_i32 = arith.constant 0 : i32
    %c0_i32_0 = arith.constant 0 : i32
    %c0_i32_1 = arith.constant 0 : i32
    return %arg0, %c0_i32, %c0_i32_0 : i32, i32, i32
  }
}

</mosaic_0001>

<bundles_post_ra>
// kernel: tpu_custom_call.1
= control target key start
LH: loop header
LB: loop body
LE: loop exit
PB: predicated region body
PF: predicated region fallthrough
CT: control target
= control target key end

     0   :  { %s1116_s0 = inlined_call_operand.vmem [shape: f32[8,8,128], index: 0, kind: input, shape index: {}]   ;;  %s1117_s1 = inlined_call_operand.vmem [shape: f32[128,16], index: 1, kind: input, shape index: {}]   ;;  %s1118_s2 = inlined_call_operand.vmem [shape: f32[1,16], index: 2, kind: input, shape index: {}]   ;;  %s1119_s3 = inlined_call_operand.vmem [shape: f32[16,8], index: 3, kind: input, shape index: {}]   ;;  %s1120_s4 = inlined_call_operand.vmem [shape: f32[8,8], index: 4, kind: input, shape index: {}]   ;;  %s1121_s5 = inlined_call_operand.hbm [shape: f32[8,8,128], index: 5, kind: output, shape index: {}]  }
   0x1   :  { %v44_v0 = vld [vmem:[%s1117_s1 + $0x78] sm:$0xff]  ;;  %v43_v1 = vld [vmem:[%s1117_s1 + $0x70] sm:$0xff]  ;;  %v42_v2 = vld [vmem:[%s1117_s1 + $0x68] sm:$0xff] }
   0x2   :  { %49 = vmatpush.msra.mxu0 %v44_v0  ;;  %809 = vmatpush.msra.mxu2 %v44_v0  ;;  %v41_v3 = vld [vmem:[%s1117_s1 + $0x60] sm:$0xff]  ;;  %v40_v4 = vld [vmem:[%s1117_s1 + $0x58] sm:$0xff] }
   0x3   :  { %810 = vmatpush.msra.mxu3 %v44_v0 }
   0x4   :  { %50 = vmatpush.msra.mxu0 %v43_v1  ;;  %811 = vmatpush.msra.mxu2 %v43_v1 }
   0x5   :  { %812 = vmatpush.msra.mxu3 %v43_v1 }
   0x6   :  { %51 = vmatpush.msra.mxu0 %v42_v2  ;;  %813 = vmatpush.msra.mxu2 %v42_v2 }
   0x7   :  { %814 = vmatpush.msra.mxu3 %v42_v2 }
   0x8   :  { %10 = vsyncpa [#allocation3], 0  ;;  %52 = vmatpush.msra.mxu0 %v41_v3  ;;  %815 = vmatpush.msra.mxu2 %v41_v3  ;;  %v39_v5 = vld [vmem:[%s1117_s1 + $0x50] sm:$0xff]  ;;  %v38_v6 = vld [vmem:[%s1117_s1 + $0x48] sm:$0xff]  ;;  %vm100_vm0 = vcmask 130048   ;;  %v921_v60 = vmov 0  }
   0x9   :  { %816 = vmatpush.msra.mxu3 %v41_v3  ;;  %v37_v7 = vld [vmem:[%s1117_s1 + $0x40] sm:$0xff]  ;;  %v36_v8 = vld [vmem:[%s1117_s1 + $0x38] sm:$0xff]  ;;  %v35_v9 = vld [vmem:[%s1117_s1 + $0x30] sm:$0xff]  ;;  %vm494_vm3 = vcmask 64512   ;;  %s781_s23 = sshll.u32 %s1121_s5, 4  ;;  %s923_s24 = smov 128   ;;  %s782_s23 = int_to_ptr.hbm [resolvable:$true] %s781_s23 }
   0xa   :  { %53 = vmatpush.msra.mxu0 %v40_v4  ;;  %817 = vmatpush.msra.mxu2 %v40_v4  ;;  %v34_v10 = vld [vmem:[%s1117_s1 + $0x28] sm:$0xff]  ;;  %v33_v11 = vld [vmem:[%s1117_s1 + $0x20] sm:$0xff]  ;;  %v32_v12 = vld [vmem:[%s1117_s1 + $0x18] sm:$0xff]  ;;  %s924_s25 = smov 8  }
   0xb   :  { %818 = vmatpush.msra.mxu3 %v40_v4  ;;  %v31_v13 = vld [vmem:[%s1117_s1 + $0x10] sm:$0xff]  ;;  %v30_v14 = vld [vmem:[%s1117_s1 + $0x8] sm:$0xff]  ;;  %v29_v15 = vld [vmem:[%s1117_s1] sm:$0xff] }
   0xc   :  { %54 = vmatpush.msra.mxu0 %v39_v5  ;;  %819 = vmatpush.msra.mxu2 %v39_v5  ;;  %v21_v16 = vld [vmem:[%s1116_s0] sm:$0xff]  ;;  %v26_v17 = vld [vmem:[%s1116_s0 + $0x28] sm:$0xff]  ;;  %v1012_v18 = vld [vmem:[%s1116_s0 + $0x30] sm:$0xff] }
   0xd   :  { %820 = vmatpush.msra.mxu3 %v39_v5  ;;  %v24_v19 = vld [vmem:[%s1116_s0 + $0x18] sm:$0xff]  ;;  %v23_v20 = vld [vmem:[%s1116_s0 + $0x10] sm:$0xff]  ;;  %v22_v21 = vld [vmem:[%s1116_s0 + $0x8] sm:$0xff] }
   0xe   :  { %55 = vmatpush.msra.mxu0 %v38_v6  ;;  %821 = vmatpush.msra.mxu2 %v38_v6  ;;  %v1027_v22 = vld [vmem:[%s1116_s0 + $0x38] sm:$0xff]  ;;  %v1033_v23 = vld [vmem:[%s1116_s0 + $0x20] sm:$0xff]  ;;  %v99_v24 = vld [vmem:[%s1119_s3 + $0x8] sm:$0xff] }
   0xf   :  { %822 = vmatpush.msra.mxu3 %v38_v6  ;;  %139 = vmatpush.msra.mxu1 %v99_v24  ;;  %v98_v25 = vld [vmem:[%s1119_s3] sm:$0xff]  ;;  %s922_s3 = smov [#allocation2]  }
  0x10   :  { %56 = vmatpush.msra.mxu0 %v37_v7  ;;  %823 = vmatpush.msra.mxu2 %v37_v7  ;;  %v846_v26 = vld [vmem:[%s1118_s2] ss:$0 sm:$0xff] }
  0x11   :  { %824 = vmatpush.msra.mxu3 %v37_v7  ;;  %140 = vmatpush.msra.mxu1 %v98_v25  ;;  %v1058_v59 = vld [vmem:[%s1120_s4] sm:$0xff]  ;;  %s779_s4 = sshll.u32 %s922_s3, 4  ;;  %s780_s4 = int_to_ptr.vmem [resolvable:$true] %s779_s4 }
  0x12   :  { %57 = vmatpush.msra.mxu0 %v36_v8  ;;  %825 = vmatpush.msra.mxu2 %v36_v8  ;;  %vm438_vm1 = vcmp.eq.f32.partialorder %v1058_v59, 0.0  ;;  %v470_v63 = vperm.slane %v1058_v59, 0  ;;  %v426_v3 = vrot.slane %v1058_v59, 3  ;;  %v427_v5 = vrot.slane %v1058_v59, 4 }
  0x13   :  { %826 = vmatpush.msra.mxu3 %v36_v8  ;;  %624 = vmatpush.msrb.mxu1 %v22_v21  ;;  %v446_v61 = vsel %vm438_vm1, 1, %v921_v60  ;;  %v428_v7 = vrot.slane %v1058_v59, 5 }
  0x14   :  { %58 = vmatpush.msra.mxu0 %v35_v9  ;;  %827 = vmatpush.msra.mxu2 %v35_v9  ;;  %v454_v62 = vperm.slane %v446_v61, 0  ;;  %vm441_vm4 = vcmp.eq.f32.partialorder %v426_v3, 0.0  ;;  %vm442_vm5 = vcmp.eq.f32.partialorder %v427_v5, 0.0  ;;  %v473_v8 = vperm.slane %v426_v3, 0 }
  0x15   :  { %828 = vmatpush.msra.mxu3 %v35_v9  ;;  %v449_v4 = vsel %vm441_vm4, 1, %v921_v60  ;;  %v450_v9 = vsel %vm442_vm5, 1, %v921_v60  ;;  %vm443_vm7 = vcmp.eq.f32.partialorder %v428_v7, 0.0 }
  0x16   :  { %59 = vmatpush.msra.mxu0 %v34_v10  ;;  %829 = vmatpush.msra.mxu2 %v34_v10  ;;  %vm462_vm2 = vcmp.eq.s32.totalorder %v454_v62, 1  ;;  %v457_v6 = vperm.slane %v449_v4, 0 }
  0x17   :  { %830 = vmatpush.msra.mxu3 %v34_v10 }
  0x18   :  { %60 = vmatpush.msra.mxu0 %v33_v11  ;;  %831 = vmatpush.msra.mxu2 %v33_v11  ;;  %vm465_vm6 = vcmp.eq.s32.totalorder %v457_v6, 1 }
  0x19   :  { %832 = vmatpush.msra.mxu3 %v33_v11 }
  0x1a   :  { %61 = vmatpush.msra.mxu0 %v32_v12  ;;  %833 = vmatpush.msra.mxu2 %v32_v12 }
  0x1b   :  { %834 = vmatpush.msra.mxu3 %v32_v12 }
  0x1c   :  { %62 = vmatpush.msra.mxu0 %v31_v13  ;;  %835 = vmatpush.msra.mxu2 %v31_v13 }
  0x1d   :  { %836 = vmatpush.msra.mxu3 %v31_v13  ;;  %v458_v13 = vperm.slane %v450_v9, 0 }
  0x1e   :  { %63 = vmatpush.msra.mxu0 %v30_v14  ;;  %837 = vmatpush.msra.mxu2 %v30_v14 }
  0x1f   :  { %838 = vmatpush.msra.mxu3 %v30_v14  ;;  %v451_v14 = vsel %vm443_vm7, 1, %v921_v60  ;;  %vm466_vm8 = vcmp.eq.s32.totalorder %v458_v13, 1 }
  0x20   :  { %64 = vmatpush.msra.mxu0 %v29_v15  ;;  %839 = vmatpush.msra.mxu2 %v29_v15 }
  0x21   :  { %65 = vmatmul.f32.vlgmr.msra.gmra.mxu0 %v21_v16  ;;  %840 = vmatpush.msra.mxu3 %v29_v15  ;;  %v474_v15 = vperm.slane %v427_v5, 0 }
  0x22   :  { %80 = vmatmul.f32.vlgmr.msra.gmra.mxu2 %v26_v17  ;;  %83 = vmatmul.f32.vlgmr.msra.gmra.mxu3 %v1012_v18 }
  0x23   :  { %601 = vmatpush.msrb.mxu2 %v21_v16  ;;  %670 = vmatpush.msrb.mxu3 %v24_v19  ;;  %v459_v16 = vperm.slane %v451_v14, 0 }
  0x25   :  { %716 = vmatpush.msra.mxu3 %v26_v17  ;;  %647 = vmatpush.msra.mxu2 %v23_v20  ;;  %vm467_vm9 = vcmp.eq.s32.totalorder %v459_v16, 1 }
  0x29   :  { %68 = vmatmul.f32.gmra.mxu0 %v22_v21 }
  0x2a   :  { %86 = vmatmul.f32.gmra.mxu3 %v1027_v22 }
  0x31   :  { %71 = vmatmul.f32.gmra.mxu0 %v23_v20  ;;  %v475_v20 = vperm.slane %v428_v7, 0  ;;  %v424_v7 = vrot.slane %v1058_v59, 1 }
  0x33   :  { %v471_v14 = vperm.slane %v424_v7, 0 }
  0x39   :  { %74 = vmatmul.f32.gmra.mxu0 %v24_v19 }
  0x41   :  { %77 = vmatmul.f32.gmra.mxu0 %v1033_v23 }
  0x9e   :  { %v66_v27 = vpop.f32.mrf.mxu0 }
  0x9f   :  { %v67_v28 = vadd.f32 %v846_v26, %v66_v27  ;;  %v430_v27 = vrot.slane %v1058_v59, 7 }
  0xa1   :  { %847 = vtanh.f32 %v67_v28  ;;  %vm445_vm10 = vcmp.eq.f32.partialorder %v430_v27, 0.0 }
  0xa2   :  { %v453_v28 = vsel %vm445_vm10, 1, %v921_v60 }
  0xa5   :  { %v81_v41 = vpop.f32.mrf.mxu2  ;;  %v84_v43 = vpop.f32.mrf.mxu3 }
  0xa6   :  { %v69_v29 = vpop.f32.mrf.mxu0  ;;  %v82_v42 = vadd.f32 %v846_v26, %v81_v41  ;;  %v85_v45 = vadd.f32 %v846_v26, %v84_v43  ;;  %v429_v41 = vrot.slane %v1058_v59, 6 }
  0xa7   :  { %v848_v30 = vpop.eup %847  ;;  %v70_v31 = vadd.f32 %v846_v26, %v69_v29  ;;  %v461_v29 = vperm.slane %v453_v28, 0 }
  0xa8   :  { %793 = vmatmul.msk.f32.vlgmr.msra.gmra.mxu1 %vm100_vm0, %v848_v30  ;;  %v477_v30 = vperm.slane %v430_v27, 0  ;;  %vm444_vm14 = vcmp.eq.f32.partialorder %v429_v41, 0.0 }
  0xa9   :  { %849 = vtanh.f32 %v70_v31  ;;  %v425_v31 = vrot.slane %v1058_v59, 2  ;;  %vm469_vm11 = vcmp.eq.s32.totalorder %v461_v29, 1 }
  0xab   :  { %vm440_vm12 = vcmp.eq.f32.partialorder %v425_v31, 0.0 }
  0xad   :  { %v87_v47 = vpop.f32.mrf.mxu3 }
  0xae   :  { %v72_v32 = vpop.f32.mrf.mxu0  ;;  %v88_v48 = vadd.f32 %v846_v26, %v87_v47 }
  0xaf   :  { %v850_v33 = vpop.eup %849  ;;  %v73_v34 = vadd.f32 %v846_v26, %v72_v32 }
  0xb0   :  { %794 = vmatmul.msk.f32.gmra.mxu1 %vm100_vm0, %v850_v33  ;;  %v448_v33 = vsel %vm440_vm12, 1, %v921_v60 }
  0xb1   :  { %851 = vtanh.f32 %v73_v34  ;;  %v472_v34 = vperm.slane %v425_v31, 0 }
  0xb6   :  { %v75_v35 = vpop.f32.mrf.mxu0 }
  0xb7   :  { %v852_v36 = vpop.eup %851  ;;  %v76_v37 = vadd.f32 %v846_v26, %v75_v35 }
  0xb8   :  { %795 = vmatmul.msk.f32.gmra.mxu1 %vm100_vm0, %v852_v36 }
  0xb9   :  { %853 = vtanh.f32 %v76_v37  ;;  %v456_v37 = vperm.slane %v448_v33, 0 }
  0xbb   :  { %vm464_vm13 = vcmp.eq.s32.totalorder %v456_v37, 1 }
  0xbe   :  { %v78_v38 = vpop.f32.mrf.mxu0 }
  0xbf   :  { %v854_v39 = vpop.eup %853  ;;  %v79_v40 = vadd.f32 %v846_v26, %v78_v38 }
  0xc0   :  { %796 = vmatmul.msk.f32.gmra.mxu1 %vm100_vm0, %v854_v39 }
  0xc1   :  { %855 = vtanh.f32 %v79_v40 }
  0xc2   :  { %857 = vtanh.f32 %v82_v42  ;;  %v452_v42 = vsel %vm444_vm14, 1, %v921_v60 }
  0xc3   :  { %859 = vtanh.f32 %v85_v45  ;;  %v460_v43 = vperm.slane %v452_v42, 0  ;;  %v476_v45 = vperm.slane %v429_v41, 0 }
  0xc4   :  { %861 = vtanh.f32 %v88_v48 }
  0xc5   :  { %vm468_vm15 = vcmp.eq.s32.totalorder %v460_v43, 1 }
  0xc7   :  { %v856_v44 = vpop.eup %855 }
  0xc8   :  { %797 = vmatmul.msk.f32.gmra.mxu1 %vm100_vm0, %v856_v44  ;;  %v858_v46 = vpop.eup %857 }
  0xc9   :  { %v860_v49 = vpop.eup %859 }
  0xca   :  { %v862_v50 = vpop.eup %861 }
  0xd0   :  { %798 = vmatmul.msk.f32.gmra.mxu1 %vm100_vm0, %v858_v46 }
  0xd8   :  { %799 = vmatmul.msk.f32.gmra.mxu1 %vm100_vm0, %v860_v49 }
  0xe0   :  { %800 = vmatmul.msk.f32.gmra.mxu1 %vm100_vm0, %v862_v50  ;;  %vm439_vm0 = vcmp.eq.f32.partialorder %v424_v7, 0.0 }
  0xe1   :  { %v447_v9 = vsel %vm439_vm0, 1, %v921_v60 }
 0x125   :  { %v142_v51 = vpop.f32.mrf.mxu1 }
 0x126   :  { %166 = vxpose.xlu0.b32.start.end [1/1] (short) (narrow) %v142_v51, 8 }
 0x12d   :  { %v1053_v52 = vpop.f32.mrf.mxu1 }
 0x135   :  { %v148_v53 = vpop.f32.mrf.mxu1 }
 0x136   :  { %230 = vxpose.xlu0.b32.start.end [1/1] (short) (narrow) %v148_v53, 8 }
 0x13d   :  { %v151_v54 = vpop.f32.mrf.mxu1 }
 0x13e   :  { %262 = vxpose.xlu1.b32.start.end [1/1] (short) (narrow) %v151_v54, 8 }
 0x145   :  { %v154_v55 = vpop.f32.mrf.mxu1 }
 0x146   :  { %294 = vxpose.xlu1.b32.start.end [1/1] (short) (narrow) %v154_v55, 8 }
 0x14d   :  { %v157_v56 = vpop.f32.mrf.mxu1 }
 0x14e   :  { %326 = vxpose.xlu2.b32.start.end [1/1] (short) (narrow) %v157_v56, 8 }
 0x155   :  { %v160_v57 = vpop.f32.mrf.mxu1 }
 0x156   :  { %358 = vxpose.xlu0.b32.start.end [1/1] (short) (narrow) %v160_v57, 8 }
 0x15d   :  { %v163_v58 = vpop.f32.mrf.mxu1 }
 0x15e   :  { %390 = vxpose.xlu1.b32.start.end [1/1] (short) (narrow) %v163_v58, 8 }
 0x1ca   :  { %v182_v0 = vpop.trf.xlu0 }
 0x1cb   :  { %v1063_v1 = vsel %vm462_vm2, %v182_v0, %v470_v63 }
 0x1cc   :  { %v495_v2 = vsel %vm494_vm3, %v1063_v1, -inf }
 0x1cd   :  { %496 = vmax.xlane.f32.xlu2 %v495_v2 }
 0x1da   :  { %v246_v36 = vpop.trf.xlu0 }
 0x1db   :  { %v488_v39 = vsel %vm464_vm13, %v246_v36, %v472_v34 }
 0x1dc   :  { %v501_v40 = vsel %vm494_vm3, %v488_v39, -inf }
 0x1dd   :  { %502 = vmax.xlane.f32.xlu0 %v501_v40 }
 0x1e2   :  { %v278_v10 = vpop.trf.xlu1 }
 0x1e3   :  { %v489_v11 = vsel %vm465_vm6, %v278_v10, %v473_v8 }
 0x1e4   :  { %v504_v12 = vsel %vm494_vm3, %v489_v11, -inf }
 0x1e5   :  { %505 = vmax.xlane.f32.xlu1 %v504_v12 }
 0x1e7   :  { %v342_v24 = vpop.trf.xlu2 }
 0x1e8   :  { %v491_v25 = vsel %vm467_vm9, %v342_v24, %v475_v20 }
 0x1e9   :  { %v510_v26 = vsel %vm494_vm3, %v491_v25, -inf }
 0x1ea   :  { %v310_v17 = vpop.trf.xlu1 }
 0x1eb   :  { %v1074_v19 = vsel %vm466_vm8, %v310_v17, %v474_v15 }
 0x1ec   :  { %v507_v21 = vsel %vm494_vm3, %v1074_v19, -inf }
 0x1ed   :  { %508 = vmax.xlane.f32.xlu2 %v507_v21 }
 0x1f5   :  { %511 = vmax.xlane.f32.xlu2 %v510_v26 }
 0x1fa   :  { %v374_v44 = vpop.trf.xlu0 }
 0x1fb   :  { %v492_v46 = vsel %vm468_vm15, %v374_v44, %v476_v45 }
 0x1fc   :  { %v513_v47 = vsel %vm494_vm3, %v492_v46, -inf }
 0x1fd   :  { %514 = vmax.xlane.f32.xlu0 %v513_v47 }
 0x202   :  { %v406_v32 = vpop.trf.xlu1 }
 0x203   :  { %v493_v35 = vsel %vm469_vm11, %v406_v32, %v477_v30 }
 0x204   :  { %v516_v38 = vsel %vm494_vm3, %v493_v35, -inf }
 0x205   :  { %517 = vmax.xlane.f32.xlu2 %v516_v38 }
 0x21f   :  { %198 = vxpose.xlu1.b32.start.end [1/1] (short) (narrow) %v1053_v52, 8 }
 0x240   :  { %v497_v48 = vpop.xlane.xlu2 %496 }
 0x241   :  { %v519_v49 = vsub.f32 %v1063_v1, %v497_v48 }
 0x243   :  { %v527_v50 = vmul.f32 1.442695, %v519_v49 }
 0x245   :  { %863 = vpow2.f32 %v527_v50 }
 0x24b   :  { %v864_v51 = vpop.eup %863 }
 0x24c   :  { %v543_v52 = vsel %vm494_vm3, %v864_v51, 0.0 }
 0x24d   :  { %544 = vadd.xlane.f32.xlu2 %v543_v52 }
 0x250   :  { %v503_v8 = vpop.xlane.xlu0 %502 }
 0x251   :  { %v521_v10 = vsub.f32 %v488_v39, %v503_v8 }
 0x253   :  { %v531_v12 = vmul.f32 1.442695, %v521_v10 }
 0x258   :  { %v506_v53 = vpop.xlane.xlu1 %505 }
 0x259   :  { %v522_v54 = vsub.f32 %v489_v11, %v506_v53  ;;  %v455_v11 = vperm.slane %v447_v9, 0 }
 0x25b   :  { %v533_v55 = vmul.f32 1.442695, %v522_v54  ;;  %vm463_vm1 = vcmp.eq.s32.totalorder %v455_v11, 1 }
 0x25d   :  { %865 = vpow2.f32 %v533_v55 }
 0x260   :  { %v509_v56 = vpop.xlane.xlu2 %508 }
 0x261   :  { %v523_v16 = vsub.f32 %v1074_v19, %v509_v56 }
 0x263   :  { %v866_v57 = vpop.eup %865  ;;  %v535_v21 = vmul.f32 1.442695, %v523_v16 }
 0x264   :  { %v552_v58 = vsel %vm494_vm3, %v866_v57, 0.0 }
 0x265   :  { %553 = vadd.xlane.f32.xlu2 %v552_v58 }
 0x268   :  { %v512_v61 = vpop.xlane.xlu2 %511 }
 0x269   :  { %v524_v62 = vsub.f32 %v491_v25, %v512_v61 }
 0x26b   :  { %v537_v63 = vmul.f32 1.442695, %v524_v62 }
 0x26d   :  { %867 = vpow2.f32 %v537_v63 }
 0x270   :  { %v515_v25 = vpop.xlane.xlu0 %514 }
 0x271   :  { %v525_v26 = vsub.f32 %v492_v46, %v515_v25 }
 0x273   :  { %v868_v0 = vpop.eup %867  ;;  %v539_v19 = vmul.f32 1.442695, %v525_v26 }
 0x274   :  { %v558_v1 = vsel %vm494_vm3, %v868_v0, 0.0 }
 0x275   :  { %559 = vadd.xlane.f32.xlu2 %v558_v1 }
 0x278   :  { %v518_v2 = vpop.xlane.xlu2 %517 }
 0x279   :  { %v526_v3 = vsub.f32 %v493_v35, %v518_v2 }
 0x27b   :  { %v541_v4 = vmul.f32 1.442695, %v526_v3 }
 0x27d   :  { %869 = vpow2.f32 %v541_v4 }
 0x283   :  { %v870_v5 = vpop.eup %869 }
 0x284   :  { %v564_v6 = vsel %vm494_vm3, %v870_v5, 0.0 }
 0x285   :  { %565 = vadd.xlane.f32.xlu2 %v564_v6 }
 0x2c0   :  { %v545_v13 = vpop.xlane.xlu2 %544 }
 0x2c1   :  { %871 = vrcp.f32 %v545_v13 }
 0x2c2   :  { %873 = vpow2.f32 %v531_v12 }
 0x2c3   :  { %v214_v15 = vpop.trf.xlu1  ;;  %875 = vpow2.f32 %v535_v21 }
 0x2c4   :  { %v487_v17 = vsel %vm463_vm1, %v214_v15, %v471_v14  ;;  %877 = vpow2.f32 %v539_v19 }
 0x2c5   :  { %v498_v20 = vsel %vm494_vm3, %v487_v17, -inf }
 0x2c6   :  { %499 = vmax.xlane.f32.xlu0 %v498_v20 }
 0x2c7   :  { %v872_v59 = vpop.eup %871 }
 0x2c8   :  { %v575_v24 = vmul.f32 %v872_v59, %v864_v51  ;;  %v874_v60 = vpop.eup %873 }
 0x2c9   :  { %v549_v27 = vsel %vm494_vm3, %v874_v60, 0.0  ;;  %v876_v28 = vpop.eup %875 }
 0x2ca   :  { %801 = vmatmul.msk.f32.vlgmr.msrb.gmra.mxu2 %vm494_vm3, %v575_v24  ;;  %v555_v29 = vsel %vm494_vm3, %v876_v28, 0.0  ;;  %v878_v31 = vpop.eup %877 }
 0x2cb   :  { %693 = vmatpush.msrb.mxu2 %v1033_v23  ;;  %v561_v32 = vsel %vm494_vm3, %v878_v31, 0.0 }
 0x2ce   :  { %550 = vadd.xlane.f32.xlu0 %v549_v27 }
 0x2d6   :  { %556 = vadd.xlane.f32.xlu0 %v555_v29 }
 0x2d8   :  { %v554_v30 = vpop.xlane.xlu2 %553 }
 0x2d9   :  { %879 = vrcp.f32 %v554_v30 }
 0x2de   :  { %562 = vadd.xlane.f32.xlu0 %v561_v32 }
 0x2df   :  { %v880_v33 = vpop.eup %879 }
 0x2e0   :  { %v578_v34 = vmul.f32 %v880_v33, %v866_v57 }
 0x2e2   :  { %804 = vmatmul.msk.f32.vlgmr.msrb.gmra.mxu3 %vm494_vm3, %v578_v34 }
 0x2e3   :  { %762 = vmatpush.msrb.mxu3 %v1027_v22 }
 0x2e8   :  { %v560_v23 = vpop.xlane.xlu2 %559 }
 0x2e9   :  { %881 = vrcp.f32 %v560_v23 }
 0x2ef   :  { %v882_v35 = vpop.eup %881 }
 0x2f0   :  { %v580_v36 = vmul.f32 %v882_v35, %v868_v0 }
 0x2f2   :  { %806 = vmatmul.msk.f32.vlgmr.msra.gmra.mxu3 %vm494_vm3, %v580_v36 }
 0x2f8   :  { %v566_v37 = vpop.xlane.xlu2 %565 }
 0x2f9   :  { %883 = vrcp.f32 %v566_v37 }
 0x2ff   :  { %v884_v38 = vpop.eup %883 }
 0x300   :  { %v582_v39 = vmul.f32 %v884_v38, %v870_v5 }
 0x302   :  { %808 = vmatmul.msk.f32.vlgmr.msrb.gmra.mxu3 %vm494_vm3, %v582_v39 }
 0x339   :  { %v500_v40 = vpop.xlane.xlu0 %499 }
 0x33a   :  { %v520_v41 = vsub.f32 %v487_v17, %v500_v40 }
 0x33c   :  { %v529_v42 = vmul.f32 1.442695, %v520_v41 }
 0x33e   :  { %885 = vpow2.f32 %v529_v42 }
 0x341   :  { %v551_v43 = vpop.xlane.xlu0 %550 }
 0x342   :  { %887 = vrcp.f32 %v551_v43 }
 0x344   :  { %v886_v44 = vpop.eup %885 }
 0x345   :  { %v546_v22 = vsel %vm494_vm3, %v886_v44, 0.0 }
 0x346   :  { %547 = vadd.xlane.f32.xlu0 %v546_v22 }
 0x348   :  { %v888_v45 = vpop.eup %887 }
 0x349   :  { %v577_v46 = vmul.f32 %v888_v45, %v874_v60  ;;  %v557_v47 = vpop.xlane.xlu0 %556 }
 0x34a   :  { %889 = vrcp.f32 %v557_v47 }
 0x34b   :  { %803 = vmatmul.msk.f32.vlgmr.msra.gmra.mxu2 %vm494_vm3, %v577_v46 }
 0x34c   :  { %739 = vmatpush.msra.mxu2 %v1012_v18 }
 0x34d   :  { %v603_v48 = vpop.f32.mrf.mxu2 }
 0x34e   :  { %767 = vst [vmem:[#allocation2] sm:$0xff] %v603_v48 }
 0x350   :  { %v890_v49 = vpop.eup %889 }
 0x351   :  { %v579_v50 = vmul.f32 %v890_v49, %v876_v28  ;;  %v563_v51 = vpop.xlane.xlu0 %562 }
 0x352   :  { %891 = vrcp.f32 %v563_v51 }
 0x353   :  { %805 = vmatmul.msk.f32.vlgmr.msrb.gmra.mxu2 %vm494_vm3, %v579_v50 }
 0x358   :  { %v892_v52 = vpop.eup %891 }
 0x359   :  { %v581_v53 = vmul.f32 %v892_v52, %v878_v31 }
 0x35b   :  { %807 = vmatmul.msk.f32.vlgmr.msra.gmra.mxu2 %vm494_vm3, %v581_v53 }
 0x365   :  { %v672_v54 = vpop.f32.mrf.mxu3 }
 0x366   :  { %770 = vst [vmem:[#allocation2 + $0x18] sm:$0xff] %v672_v54 }
 0x375   :  { %v718_v55 = vpop.f32.mrf.mxu3 }
 0x376   :  { %772 = vst [vmem:[#allocation2 + $0x28] sm:$0xff] %v718_v55 }
 0x385   :  { %v764_v56 = vpop.f32.mrf.mxu3 }
 0x386   :  { %774 = vst [vmem:[#allocation2 + $0x38] sm:$0xff] %v764_v56 }
 0x3b9   :  { %v548_v57 = vpop.xlane.xlu0 %547 }
 0x3ba   :  { %893 = vrcp.f32 %v548_v57 }
 0x3c0   :  { %v894_v18 = vpop.eup %893 }
 0x3c1   :  { %v576_v58 = vmul.f32 %v894_v18, %v886_v44 }
 0x3c3   :  { %802 = vmatmul.msk.f32.vlgmr.msrb.gmra.mxu1 %vm494_vm3, %v576_v58 }
 0x3ce   :  { %v649_v61 = vpop.f32.mrf.mxu2 }
 0x3cf   :  { %769 = vst [vmem:[#allocation2 + $0x10] sm:$0xff] %v649_v61 }
 0x3d6   :  { %v695_v62 = vpop.f32.mrf.mxu2 }
 0x3d7   :  { %771 = vst [vmem:[#allocation2 + $0x20] sm:$0xff] %v695_v62 }
 0x3de   :  { %v741_v63 = vpop.f32.mrf.mxu2 }
 0x3df   :  { %773 = vst [vmem:[#allocation2 + $0x30] sm:$0xff] %v741_v63 }
 0x440   :  { %v626_v0 = vpop.f32.mrf.mxu1 }
 0x441   :  { %768 = vst [vmem:[#allocation2 + $0x8] sm:$0xff] %v626_v0 }
 0x442   :  { %787 = dma.vmem_to_hbm [thread:$0]  %s780_s4, 1024, %s782_s23, [#allocation3], %s923_s24, %s923_s24, %s924_s25  }
 0x443   :  { %919 = dma.done.wait [#allocation3], 1024  }
 0x444   :  { %920 = vsyncadd [#allocation3], 4294966272 }
 0x445   :  { %792 = vsyncpa [#allocation3], 1 }

</bundles_post_ra>
